<compile_context>
chip_gen: v6e
topology: v6e:2x2x1
jax: 0.10.0
libtpu: 0.0.40
codegen_flags: <defaults>
</compile_context>

<pallas_src>
import functools

import jax
import jax.numpy as jnp
from jax.experimental import pallas as pl
from jax.experimental.pallas import tpu as pltpu

# ---------------- CapsNet static dimensions (MNIST geometry) ----------------
N_IN = 32 * 6 * 6   # 1152 primary capsules
D_IN = 8            # primary capsule length
N_OUT = 10          # digit capsules
N_OUT_PAD = 16      # routing-logit sublane padding (full 8-sublane tiles)
D_OUT = 16          # digit capsule length
ROUTING_ITERS = 3

H1 = W1 = 20        # conv1 output spatial
H2 = W2 = 6         # conv2 output spatial
C1 = 256            # conv1/conv2 channels
K_CONV = 9          # conv kernel size
LANES1 = W1 * C1    # 5120  (w, c) flattened into lanes
KPATCH = K_CONV * C1  # 2304 per-kh contraction (kw, ci)


def _round_up(x, m):
    return (x + m - 1) // m * m


def _vmem_limit_bytes():
    """Scoped VMEM budget: <= 3/4 of physical per-TC VMEM (v7x only has 64 MiB)."""
    try:
        return int(min(pltpu.get_tpu_info().vmem_capacity_bytes * 3 // 4,
                       96 * 1024 * 1024))
    except Exception:
        return 48 * 1024 * 1024


def _pick_tm(M, tm_max=1024):
    """Pick an M tile (multiple of 16) and the padded M it implies.
    Prefers >= 2 tiles so the v7x megacore 'parallel' axis has work for both TCs."""
    top = min(tm_max, M)
    if M >= 256:
        top = min(top, M // 2)
    top -= top % 16
    top = max(top, 16)
    for tm in range(top, 127, -16):
        if M % tm == 0:
            return tm, M
    if M <= top:
        tm = _round_up(M, 16)
        return tm, tm
    return top, _round_up(M, top)


def _pick_batch_tile(B, prefs=(8, 4, 2, 1)):
    """Largest batch tile that divides B, preferring >= 2 grid tiles (v7x 2-TC)."""
    for tb in prefs:
        if B % tb == 0 and B // tb >= 2:
            return tb
    for tb in prefs:
        if B % tb == 0:
            return tb
    return 1


# ---------------------------------------------------------------------------
# Pallas kernel 1: conv1 as a single-K bf16 matmul + f32 bias + ReLU
# ---------------------------------------------------------------------------
def _conv1_kernel(a_ref, w_ref, bias_ref, o_ref):
    acc = jnp.dot(a_ref[...], w_ref[...], preferred_element_type=jnp.float32)
    o_ref[...] = jnp.maximum(acc + bias_ref[...], 0.0).astype(o_ref.dtype)


def conv1_matmul(p1, w1m, b1, *, tm_max=1024):
    """p1: (M, 81), w1m: (81, 256), b1: (256,) -> (M, 256) f32 (ReLU applied)."""
    M, K = p1.shape
    N = w1m.shape[1]
    a = p1.astype(jnp.bfloat16)
    w = w1m.astype(jnp.bfloat16)
    bias = b1.reshape(1, N).astype(jnp.float32)

    tm, Mp = _pick_tm(M, tm_max)
    if Mp != M:
        a = jnp.pad(a, ((0, Mp - M), (0, 0)))

    out = pl.pallas_call(
        _conv1_kernel,
        out_shape=jax.ShapeDtypeStruct((Mp, N), jnp.float32),
        grid_spec=pltpu.PrefetchScalarGridSpec(
            num_scalar_prefetch=0,
            grid=(Mp // tm,),
            in_specs=[
                pl.BlockSpec((tm, K), lambda i: (i, 0)),   # last dim 81 == full array dim
                pl.BlockSpec((K, N), lambda i: (0, 0)),
                pl.BlockSpec((1, N), lambda i: (0, 0)),
            ],
            out_specs=pl.BlockSpec((tm, N), lambda i: (i, 0)),
        ),
        compiler_params=pltpu.CompilerParams(
            dimension_semantics=("parallel",),
            vmem_limit_bytes=_vmem_limit_bytes(),
        ),
    )(a, w, bias)
    return out[:M] if Mp != M else out


# ---------------------------------------------------------------------------
# Pallas kernel 2: conv2 (9x9, stride 2) with the im2col gather fused in-kernel
# ---------------------------------------------------------------------------
def _conv2_fused_kernel(x_ref, w_ref, b_ref, o_ref, a_ref, acc_ref, *, tb):
    # x_ref:   (TB, 2, 10, 5120) f32  conv1 output, h split by parity, (w, c) in lanes
    # w_ref:   (9, 2304, 256)  bf16  conv2 weight [kh, kw*256 + ci, co]  (VMEM resident)
    # b_ref:   (1, 256)        f32   conv2 bias
    # o_ref:   (TB, 36, 256)   f32   per-sample rows ordered (ow, oh)
    # a_ref:   (TB*36, 2304)   bf16  per-kh im2col slab (VMEM scratch)
    # acc_ref: (TB*36, 256)    f32   accumulator (VMEM scratch)
    for kh in range(K_CONV):
        par = kh % 2
        start = kh // 2
        for s in range(tb):
            # rows[oh, w*256 + c] = conv1_out[s, oh*2 + kh, w, c]   (contiguous 6-row load)
            rows = x_ref[s, par, pl.ds(start, 6), :]                 # (6, 5120) f32
            for ow in range(6):
                a_ref[pl.ds(s * 36 + ow * 6, 6), :] = (
                    rows[:, ow * 512: ow * 512 + KPATCH].astype(jnp.bfloat16))
        contrib = jnp.dot(a_ref[...], w_ref[kh],
                          preferred_element_type=jnp.float32)        # (TB*36, 256)
        if kh == 0:
            acc_ref[...] = contrib
        else:
            acc_ref[...] = acc_ref[...] + contrib

    bias = b_ref[...]
    for s in range(tb):
        o_ref[s] = acc_ref[pl.ds(s * 36, 36), :] + bias


def conv2_fused(x2, w2m, b2, *, tb):
    """x2: (B, 2, 10, 5120) f32, w2m: (9, 2304, 256) bf16, b2: (256,) -> (B, 36, 256) f32.
    Per-sample output rows are ordered (ow, oh), i.e. torch's transpose(1, -1) flatten."""
    B = x2.shape[0]
    return pl.pallas_call(
        functools.partial(_conv2_fused_kernel, tb=tb),
        out_shape=jax.ShapeDtypeStruct((B, 36, C1), jnp.float32),
        grid_spec=pltpu.PrefetchScalarGridSpec(
            num_scalar_prefetch=0,
            grid=(B // tb,),
            in_specs=[
                pl.BlockSpec((tb, 2, 10, LANES1), lambda i: (i, 0, 0, 0)),
                # constant index_map: weight DMA'd once, stays resident in VMEM
                pl.BlockSpec((K_CONV, KPATCH, C1), lambda i: (0, 0, 0)),
                pl.BlockSpec((1, C1), lambda i: (0, 0)),
            ],
            out_specs=pl.BlockSpec((tb, 36, C1), lambda i: (i, 0, 0)),
            scratch_shapes=[
                pltpu.VMEM((tb * 36, KPATCH), jnp.bfloat16),   # per-kh patch slab
                pltpu.VMEM((tb * 36, C1), jnp.float32),        # f32 accumulator
            ],
        ),
        compiler_params=pltpu.CompilerParams(
            dimension_semantics=("parallel",),
            vmem_limit_bytes=_vmem_limit_bytes(),
        ),
    )(x2, w2m, b2.reshape(1, C1).astype(jnp.float32))


# ---------------------------------------------------------------------------
# Pallas kernel 3: capsule layer (prediction vectors + dynamic routing), batched
# ---------------------------------------------------------------------------
def _capsule_kernel(x_ref, w_ref, o_ref, u_ref, b_ref, *, tb):
    # x_ref: (TB, 8, 1152) f32          x[b, p, i]   (primary capsules, i on lanes)
    # w_ref: (10, 8, 16, 1152) f32      W[j, p, q, i]  (constant index_map, DMA'd once)
    # o_ref: (TB, 10, 16) f32           v[b, j, q]
    # u_ref: VMEM (10, TB, 16, 1152) f32 scratch   u_hat[j, b, q, i]
    # b_ref: VMEM (TB, 16, 1152) f32 scratch       routing logits (rows >= 10 padded)
    x = x_ref[...]                                        # (TB, 8, 1152)

    # ---- prediction vectors: u_hat[b,j,q,i] = sum_p x[b,p,i] * W[j,p,q,i] ----
    # TODO(synk): this contraction cannot use the MXU (W varies with i); it stays on the VPU.
    @pl.loop(0, N_OUT)
    def _uhat(j):
        w_j = w_ref[j]                                    # (8, 16, 1152) f32
        acc = x[:, 0:1, :] * w_j[0:1]                     # (TB, 16, 1152)
        for p in range(1, D_IN):
            acc = acc + x[:, p:p + 1, :] * w_j[p:p + 1]
        u_ref[j] = acc

    # ---- routing logits: padded rows get -1e30 so they vanish from the softmax ----
    rowid = jax.lax.broadcasted_iota(jnp.int32, (tb, N_OUT_PAD, N_IN), 1)
    b_ref[...] = jnp.where(rowid < N_OUT, 0.0, -1e30).astype(jnp.float32)

    # ---- dynamic routing ----
    for it in range(ROUTING_ITERS):
        bl = b_ref[...]                                   # (TB, 16, 1152)
        m = jnp.max(bl, axis=1, keepdims=True)
        e = jnp.exp(bl - m)
        denom = jnp.sum(e, axis=1, keepdims=True)
        c = e * pl.reciprocal(denom, approx=True)         # EUP reciprocal + muls

        vs = []
        for j in range(N_OUT):                            # static unroll over 10 capsules
            u_j = u_ref[j]                                                  # (TB, 16, 1152)
            s = jnp.sum(c[:, j:j + 1, :] * u_j, axis=-1, keepdims=True)     # (TB, 16, 1)
            sq = jnp.sum(s * s, axis=1, keepdims=True)                      # (TB, 1, 1)
            v_j = (sq / (1.0 + sq)) * s * jax.lax.rsqrt(sq + 1e-9)          # squash
            if it < ROUTING_ITERS - 1:
                b_ref[:, j:j + 1, :] = (b_ref[:, j:j + 1, :]
                                        + jnp.sum(u_j * v_j, axis=1, keepdims=True))
            else:
                vs.append(v_j[:, :, 0])                                     # (TB, 16)
        if it == ROUTING_ITERS - 1:
            o_ref[...] = jnp.stack(vs, axis=1)            # single (TB, 10, 16) store


def capsule_call(x_pin, w_caps):
    """x_pin: (B, 8, 1152), w_caps: (10, 8, 16, 1152) -> (B, 10, 16) f32."""
    B = x_pin.shape[0]
    tb = _pick_batch_tile(B, prefs=(4, 2, 1))
    return pl.pallas_call(
        functools.partial(_capsule_kernel, tb=tb),
        out_shape=jax.ShapeDtypeStruct((B, N_OUT, D_OUT), jnp.float32),
        grid_spec=pltpu.PrefetchScalarGridSpec(
            num_scalar_prefetch=0,
            grid=(B // tb,),
            in_specs=[
                pl.BlockSpec((tb, D_IN, N_IN), lambda i: (i, 0, 0)),
                # constant index_map: f32 W (~5.9 MB) is DMA'd once and reused
                pl.BlockSpec((N_OUT, D_IN, D_OUT, N_IN), lambda i: (0, 0, 0, 0)),
            ],
            out_specs=pl.BlockSpec((tb, N_OUT, D_OUT), lambda i: (i, 0, 0)),
            scratch_shapes=[
                pltpu.VMEM((N_OUT, tb, D_OUT, N_IN), jnp.float32),   # u_hat
                pltpu.VMEM((tb, N_OUT_PAD, N_IN), jnp.float32),      # routing logits
            ],
        ),
        compiler_params=pltpu.CompilerParams(
            dimension_semantics=("parallel",),
            vmem_limit_bytes=_vmem_limit_bytes(),
        ),
    )(x_pin.astype(jnp.float32), w_caps.astype(jnp.float32))


# ---------------------------------------------------------------------------
# Host-side glue (cheap reshapes / small patch build only)
# ---------------------------------------------------------------------------
def _conv1_patches_parity(x):
    """x: (B, 1, 28, 28) -> (B*400, 81) patches, features (kh, kw),
    rows ordered (b, h % 2, h // 2, w) so the fused conv2 gather is contiguous."""
    B = x.shape[0]
    cols = []
    for kh in range(K_CONV):
        for kw in range(K_CONV):
            cols.append(x[:, 0, kh:kh + H1, kw:kw + W1])          # (B, 20, 20)
    p = jnp.stack(cols, axis=-1)                                  # (B, 20, 20, 81)
    p = p.reshape(B, H1 // 2, 2, W1, 81).transpose(0, 2, 1, 3, 4)  # (B, 2, 10, 20, 81)
    return p.reshape(B * H1 * W1, K_CONV * K_CONV)


def capsnet_forward(x, params):
    """CapsNet.forward. x: (B, 1, 28, 28) f32 NCHW -> (B, 10, 16) f32."""
    w1, b1, w2, b2, wc = params
    B = x.shape[0]

    # conv1: 1 -> 256, 9x9, stride 1, + ReLU (single Pallas matmul, K = 81, no zero-pad).
    p1 = _conv1_patches_parity(x)                    # (B*400, 81), rows (b, h%2, h//2, w)
    w1m = w1.reshape(C1, K_CONV * K_CONV).T          # (81, 256)
    o1 = conv1_matmul(p1, w1m, b1)                   # (B*400, 256) f32, NHWC row order
    # free reshape: (b, h%2, h//2, (w, c)) -- no NCHW round trip, no HBM transpose
    x2 = o1.reshape(B, 2, H1 // 2, LANES1)

    # conv2: 256 -> 256, 9x9, stride 2 (no activation); im2col gather fused in-kernel.
    w2m = jnp.transpose(w2, (2, 3, 1, 0)).reshape(K_CONV, KPATCH, C1).astype(jnp.bfloat16)
    tb2 = _pick_batch_tile(B, prefs=(8, 4, 2, 1))
    o2 = conv2_fused(x2, w2m, b2, tb=tb2)            # (B, 36, 256), rows (ow, oh)

    # torch: (B,256,6,6).transpose(1,-1).contiguous().view(B, 1152, 8)
    #   == flatten in (w, h, c) order, which is exactly the kernel's (ow, oh, c) rows.
    caps_in = o2.reshape(B, N_IN, D_IN)              # (B, 1152, 8)
    # capsule kernel expects (B, 8, 1152) with the primary-capsule index on lanes
    v = capsule_call(jnp.transpose(caps_in, (0, 2, 1)), wc)   # (B, 10, 16)
    return v


# ---------------------------------------------------------------------------
if __name__ == "__main__":
    key = jax.random.PRNGKey(0)
    k1, k2, k3, k4, k5, kx = jax.random.split(key, 6)

    B = 2  # small batch; spatial/channel sizes are fixed by the module (28x28 MNIST geometry)
    x = jax.random.normal(kx, (B, 1, 28, 28), jnp.float32)

    # Deterministic synthetic parameters (shapes from CapsNet.__init__)
    w1 = jax.random.normal(k1, (256, 1, 9, 9), jnp.float32) * 0.1     # conv1 weight
    b1 = jax.random.normal(k2, (256,), jnp.float32) * 0.1             # conv1 bias
    w2 = jax.random.normal(k3, (256, 256, 9, 9), jnp.float32) * 0.02  # conv2 weight
    b2 = jax.random.normal(k4, (256,), jnp.float32) * 0.02            # conv2 bias
    # capsule routing weights, stored in kernel layout [j, p, q, i]
    wc = jax.random.normal(k5, (N_OUT, D_IN, D_OUT, N_IN), jnp.float32) * 0.05

    out = capsnet_forward(x, (w1, b1, w2, b2, wc))
    out = jax.block_until_ready(out)
    assert out.shape == (B, N_OUT, D_OUT)
    assert bool(jnp.all(jnp.isfinite(out)))

    # same readout as test(): predicted class = argmax over capsule L2 norms
    pred = jax.block_until_ready(jnp.argmax(jnp.linalg.norm(out, axis=-1), axis=-1))
    assert pred.shape == (B,)

    print("KERNEL_OK")
</pallas_src>

<mosaic_0001>
module attributes {stable_mosaic.version = 11 : i64} {
  func.func @_conv1_kernel(%arg0: i32, %arg1: memref<400x81xbf16, #tpu.memory_space<vmem>>, %arg2: memref<81x256xbf16, #tpu.memory_space<vmem>>, %arg3: memref<1x256xf32, #tpu.memory_space<vmem>>, %arg4: memref<400x256xf32, #tpu.memory_space<vmem>>) attributes {dimension_semantics = [#tpu.dimension_semantics<parallel>], iteration_bounds = array<i64: 2>, scalar_prefetch = 0 : i64, scratch_operands = 0 : i64, tpu.core_type = #tpu.core_type<tc>, window_params = [{transform_indices = @transform_0, window_bounds = array<i64: 400, 81>}, {pipeline_mode = #tpu.pipeline_mode<synchronous>, transform_indices = @transform_1, window_bounds = array<i64: 81, 256>}, {pipeline_mode = #tpu.pipeline_mode<synchronous>, transform_indices = @transform_2, window_bounds = array<i64: 1, 256>}, {transform_indices = @transform_3, window_bounds = array<i64: 400, 256>}]} {
    %c0 = arith.constant 0 : index
    %c0_0 = arith.constant 0 : index
    %0 = vector.load %arg1[%c0, %c0_0] : memref<400x81xbf16, #tpu.memory_space<vmem>>, vector<400x81xbf16>
    %c0_1 = arith.constant 0 : index
    %c0_2 = arith.constant 0 : index
    %1 = vector.load %arg2[%c0_1, %c0_2] : memref<81x256xbf16, #tpu.memory_space<vmem>>, vector<81x256xbf16>
    %cst = arith.constant dense<0.000000e+00> : vector<400x256xf32>
    %2 = tpu.matmul %0, %1, %cst {dimension_numbers = #tpu.dot_dimension_numbers<[1], [0], [0], [1], [0, 0, 1, 1], [], []>} : vector<400x81xbf16>, vector<81x256xbf16>, vector<400x256xf32> -> vector<400x256xf32>
    %c0_3 = arith.constant 0 : index
    %c0_4 = arith.constant 0 : index
    %3 = vector.load %arg3[%c0_3, %c0_4] : memref<1x256xf32, #tpu.memory_space<vmem>>, vector<1x256xf32>
    %4 = vector.broadcast %3 : vector<1x256xf32> to vector<400x256xf32>
    %5 = arith.addf %2, %4 : vector<400x256xf32>
    %cst_5 = arith.constant 0.000000e+00 : f32
    %6 = vector.broadcast %cst_5 : f32 to vector<400x256xf32>
    %7 = arith.maximumf %5, %6 : vector<400x256xf32>
    %c0_6 = arith.constant 0 : index
    %c0_7 = arith.constant 0 : index
    %8 = vector.load %arg4[%c0_6, %c0_7] : memref<400x256xf32, #tpu.memory_space<vmem>>, vector<400x256xf32>
    tpu.vector_store %arg4[%c0_6, %c0_7], %7 {strides = array<i32>} : memref<400x256xf32, #tpu.memory_space<vmem>>, vector<400x256xf32>,
    return
  }
  func.func @transform_0(%arg0: i32) -> (i32, i32) {
    %c0_i32 = arith.constant 0 : i32
    %c0_i32_0 = arith.constant 0 : i32
    return %arg0, %c0_i32 : i32, i32
  }
  func.func @transform_1(%arg0: i32) -> (i32, i32) {
    %c0_i32 = arith.constant 0 : i32
    %c0_i32_0 = arith.constant 0 : i32
    %c0_i32_1 = arith.constant 0 : i32
    return %c0_i32, %c0_i32_0 : i32, i32
  }
  func.func @transform_2(%arg0: i32) -> (i32, i32) {
    %c0_i32 = arith.constant 0 : i32
    %c0_i32_0 = arith.constant 0 : i32
    %c0_i32_1 = arith.constant 0 : i32
    return %c0_i32, %c0_i32_0 : i32, i32
  }
  func.func @transform_3(%arg0: i32) -> (i32, i32) {
    %c0_i32 = arith.constant 0 : i32
    %c0_i32_0 = arith.constant 0 : i32
    return %arg0, %c0_i32 : i32, i32
  }
}

</mosaic_0001>

<bundles_post_ra>
// kernel: tpu_custom_call.1
= control target key start
LH: loop header
LB: loop body
LE: loop exit
PB: predicated region body
PF: predicated region fallthrough
CT: control target
= control target key end

     0   :  { %8 = vsyncpa [#allocation3], 0  ;;  %s1754_s0 = inlined_call_operand.vmem [shape: bf16[800,81], index: 0, kind: input, shape index: {}]   ;;  %s1755_s1 = inlined_call_operand.vmem [shape: bf16[81,256], index: 1, kind: input, shape index: {}]   ;;  %s1756_s2 = inlined_call_operand.vmem [shape: f32[1,256], index: 2, kind: input, shape index: {}]   ;;  %s1757_s3 = inlined_call_operand.hbm [shape: f32[800,256], index: 3, kind: output, shape index: {}]  }
   0x1   :  { %10 = vsyncpa [#allocation3 + $0x1], 0  ;;  %s1328_s12 = smov 0   ;;  %s1330_s13 = smov 0  }
   0x2   :  { %s1332_s14 = smov 0   ;;  %s1334_s15 = smov 0  }
   0x3 LB: > { %s1349_s16 = sadd.s32 4294967295, %s1302_s15   ;;  %s1071_s17 = sadd.s32 4294967294, %s1302_s15   ;;  %s1302_s15 = sphi %s1334_s15, %s1763_s15   ;;  %s1298_s14 = sphi %s1332_s14, %s1762_s14   ;;  %s1294_s13 = sphi %s1330_s13, %s1761_s13   ;;  %s1290_s12 = sphi %s1328_s12, %s1760_s12  }
   0x4   : > { %s1353_s18 = sadd.s32 1, %s1302_s15   ;;  %s91_s19 = sadd.s32 1, %s1298_s14 }
   0x5   : > { %s88_s20 = ssub.s32 %s1302_s15, %s1353_s18  ;;  %p101_p0 = scmp.ne.s32.totalorder %s1298_s14, %s1294_s13 }
   0x6   : > { %p89_p1 = scmp.eq.s32.totalorder %s88_s20, 0  ;;  %p102_p2 = scmp.eq.s32.totalorder %s1349_s16, 1 }
   0x7   : > { %p107_p3 = scmp.ne.s32.totalorder %s1294_s13, %s1290_s12  ;;  %p108_p4 = scmp.eq.s32.totalorder %s1071_s17, 1 }
   0x8   : > { %s1364_s21 = scalar_select %p89_p1, %s1298_s14, %s91_s19  }
   0x9   : > { %p1366_p5 = por %p102_p2, %p101_p0  ;;  %p1370_p6 = por %p108_p4, %p107_p3 }
   0xa   : > { %p1074_p7 = scmp.ge.s32.totalorder %s1302_s15, 1  ;;  %p141_p8 = scmp.lt.s32.totalorder %s1302_s15, 3 }
   0xc   : > { %p142_p9 = pnand %p1074_p7, %p141_p8 }
   0xd   : > { %s165_s26 = smul.u32 (!%p142_p9), 50, %s1349_s16  ;;  %s162_s8 = sand.u32 (!%p142_p9), 1, %s1294_s13  }
   0xe   : > { %145 = sbr.rel (%p142_p9) target bundleno = 361 (0x169), region = 32 }
   0xf   : > { %p166_p10 = scmp.lt.s32.totalorder (!%p142_p9), %s165_s26, 99  ;;  %s1157_s10 = smul.u32 (!%p142_p9), 800, %s162_s8 }
  0x10   : > { %s1144_s11 = smul.u32 (!%p142_p9), 12800, %s1349_s16  ;;  %s1714_s16 = scalar_lea.sflag (!%p142_p9), [#allocation3], %s162_s8 }
  0x12   : > { %s1706_s24 = scalar_lea.hbm (!%p142_p9), %s1757_s3, %s1144_s11 }
  0x13   : > { %v233_v0 = vld [vmem:[%s1755_s1 + $0x50] sm:$0x11]  ;;  %vm502_vm0 = vcmask 1040384   ;;  %v1304_v2 = vmov 0   ;;  %v1202_v7 = vld [vmem:[%s1755_s1 + $0x44] ss:$8 sps:$4 sm:$0xff]   ;;  %v236_v42 = vlaneseq }
  0x14   : > { %v1112_v1 = vcombine.high %v233_v0, %v233_v0  ;;  %v504_v3 = vsel %vm502_vm0, 65535, %v1304_v2  ;;  %v1111_v4 = vcombine.low %v233_v0, %v233_v0  ;;  %543 = vmatprep.mubr.bf16.mxu0 %v1304_v2  ;;  %673 = vmatprep.mubr.bf16.mxu1 %v1304_v2  ;;  %v1204_v8 = vld [vmem:[%s1755_s1 + $0x40] ss:$8 sps:$4 sm:$0xff]   ;;  %s1765_s26 = smov (!%p166_p10, %s165_s26), 99  ;;  %v1205_v9 = vld [vmem:[%s1755_s1 + $0x34] ss:$8 sps:$4 sm:$0xff]  }
  0x15   : > { %s1075_s6 = sshll.u32 %s1765_s26, 2  ;;  %v1207_v10 = vld [vmem:[%s1755_s1 + $0x30] ss:$8 sps:$4 sm:$0xff]   ;;  %v1208_v11 = vld [vmem:[%s1755_s1 + $0x24] ss:$8 sps:$4 sm:$0xff]   ;;  %vm426_vm1 = vcmask 662528  }
  0x16   : > { %v509_v5 = vand.u32 %v1112_v1, %v504_v3  ;;  %v506_v6 = vand.u32 %v1111_v4, %v504_v3  ;;  %s1395_s9 = scalar_lea.vmem %s1754_s0, %s1075_s6  ;;  %v1210_v12 = vld [vmem:[%s1755_s1 + $0x20] ss:$8 sps:$4 sm:$0xff]   ;;  %v1211_v13 = vld [vmem:[%s1755_s1 + $0x14] ss:$8 sps:$4 sm:$0xff]   ;;  %v1213_v14 = vld [vmem:[%s1755_s1 + $0x10] ss:$8 sps:$4 sm:$0xff]  }
  0x17   : > { %v1214_v15 = vld [vmem:[%s1755_s1 + $0x4] ss:$8 sps:$4 sm:$0xff]   ;;  %v1216_v16 = vld [vmem:[%s1755_s1] ss:$8 sps:$4 sm:$0xff]   ;;  %v1220_v20 = vld [vmem:[%s1395_s9 + $0x70] sm:$0xff]   ;;  %v237_v43 = vshrl.u32 %v236_v42, 7 }
  0x18   : > { %515 = vmatprep.subr.bf16.mxu0 %v509_v5  ;;  %1145 = vmatprep.subr.bf16.mxu1 %v509_v5  ;;  %v1217_v17 = vld [vmem:[%s1395_s9] sm:$0xff]   ;;  %v1218_v18 = vld [vmem:[%s1395_s9 + $0x68] sm:$0xff]   ;;  %v1221_v21 = vld [vmem:[%s1395_s9 + $0x10] sm:$0xff]   ;;  %s1305_s26 = smov [#allocation2]  }
  0x19   : > { %516 = vmatpush1.bf16.msra.mxu0 %v506_v6  ;;  %1151 = vmatpush1.bf16.msra.mxu1 %v506_v6  ;;  %v1219_v19 = vld [vmem:[%s1395_s9 + $0x8] sm:$0xff]   ;;  %v1222_v22 = vld [vmem:[%s1395_s9 + $0x78] sm:$0xff]   ;;  %v1224_v24 = vld [vmem:[%s1395_s9 + $0x80] sm:$0xff]   ;;  %v238_v44 = vsub.s32 0, %v237_v43  ;;  %v242_v46 = vsub.s32 1, %v237_v43  ;;  %s1246_s27 = sshll.u32 %s1305_s26, 4  ;;  %s1247_s27 = int_to_ptr.vmem [resolvable:$false] %s1246_s27 }
  0x1a   : > { %517 = vmatprep.subr.bf16.mxu0 %v1202_v7  ;;  %1146 = vmatprep.subr.bf16.mxu1 %v1202_v7  ;;  %v1223_v23 = vld [vmem:[%s1395_s9 + $0x18] sm:$0xff]   ;;  %v1225_v25 = vld [vmem:[%s1395_s9 + $0x20] sm:$0xff]   ;;  %v1226_v26 = vld [vmem:[%s1395_s9 + $0x88] sm:$0xff]   ;;  %s1248_s28 = scalar_lea.vmem %s1247_s27, 25600 }
  0x1b   : > { %v1227_v27 = vld [vmem:[%s1395_s9 + $0x28] sm:$0xff]   ;;  %v1228_v28 = vld [vmem:[%s1395_s9 + $0x90] sm:$0xff]   ;;  %v1230_v30 = vld [vmem:[%s1395_s9 + $0x98] sm:$0xff]  }
  0x1c   : > { %v1229_v29 = vld [vmem:[%s1395_s9 + $0x30] sm:$0xff]   ;;  %v1231_v31 = vld [vmem:[%s1395_s9 + $0x38] sm:$0xff]   ;;  %v1232_v32 = vld [vmem:[%s1395_s9 + $0xa0] sm:$0xff]  }
  0x1d   : > { %518 = vmatpush1.bf16.msra.mxu0 %v1204_v8  ;;  %1152 = vmatpush1.bf16.msra.mxu1 %v1204_v8  ;;  %v1233_v33 = vld [vmem:[%s1395_s9 + $0x40] sm:$0xff]   ;;  %v1234_v34 = vld [vmem:[%s1395_s9 + $0xa8] sm:$0xff]   ;;  %v1236_v36 = vld [vmem:[%s1395_s9 + $0xb0] sm:$0xff]  }
  0x1e   : > { %519 = vmatprep.subr.bf16.mxu0 %v1205_v9  ;;  %1147 = vmatprep.subr.bf16.mxu1 %v1205_v9  ;;  %v1235_v35 = vld [vmem:[%s1395_s9 + $0x48] sm:$0xff]   ;;  %v1237_v37 = vld [vmem:[%s1395_s9 + $0x50] sm:$0xff]   ;;  %v1238_v38 = vld [vmem:[%s1395_s9 + $0xb8] sm:$0xff]  }
  0x1f   : > { %v1239_v39 = vld [vmem:[%s1395_s9 + $0x58] sm:$0xff]   ;;  %v1240_v40 = vld [vmem:[%s1395_s9 + $0xc0] sm:$0xff]  }
  0x20   : > { %v1241_v41 = vld [vmem:[%s1395_s9 + $0x60] sm:$0xff]   ;;  %s1505_s9 = scalar_lea.vmem [#allocation2], %s1157_s10 }
  0x21   : > { %520 = vmatpush1.bf16.msra.mxu0 %v1207_v10  ;;  %1153 = vmatpush1.bf16.msra.mxu1 %v1207_v10  ;;  %v234_v45 = vld [vmem:[%s1756_s2] sm:$0x3]  ;;  %s1009_s17 = sshll.u32 %s1505_s9, 4  ;;  %s1708_s17 = int_to_ptr.vmem [resolvable:$true] %s1009_s17 }
  0x22   : > { %521 = vmatprep.subr.bf16.mxu0 %v1208_v11  ;;  %1148 = vmatprep.subr.bf16.mxu1 %v1208_v11  ;;  %v1495_v47 = vrot.slane %v234_v45, %v238_v44  ;;  %v1499_v48 = vrot.slane %v234_v45, %v242_v46  ;;  %s1242_s25 = scalar_lea.vmem %s1708_s17, 12800  ;;  %p1249_p0 = scmp.lt.s32.totalorder %s1708_s17, %s1247_s27 }
  0x23   : > { %p1243_p11 = scmp.ne.s32.totalorder %s1708_s17, %s1242_s25  ;;  %p1250_p1 = scmp.lt.s32.totalorder %s1248_s28, %s1242_s25 }
  0x25   : > { %522 = vmatpush1.bf16.msra.mxu0 %v1210_v12  ;;  %1154 = vmatpush1.bf16.msra.mxu1 %v1210_v12  ;;  %p1244_p12 = pnand %p1243_p11, %p1366_p5  ;;  %p1251_p2 = por %p1250_p1, %p1249_p0 }
  0x26   : > { %523 = vmatprep.subr.bf16.mxu0 %v1211_v13  ;;  %1149 = vmatprep.subr.bf16.mxu1 %v1211_v13 }
  0x27   : > { %p1245_p13 = pneg %p1244_p12 }
  0x29   : > { %524 = vmatpush1.bf16.msra.mxu0 %v1213_v14  ;;  %1155 = vmatpush1.bf16.msra.mxu1 %v1213_v14  ;;  %p1252_p3 = pnand %p1251_p2, %p1245_p13 }
  0x2a   : > { %525 = vmatprep.subr.bf16.mxu0 %v1214_v15  ;;  %1150 = vmatprep.subr.bf16.mxu1 %v1214_v15 }
  0x2d   : > { %526 = vmatpush1.bf16.msra.mxu0 %v1216_v16  ;;  %1156 = vmatpush1.bf16.msra.mxu1 %v1216_v16 }
  0x30   : > { %1113 = vmatmul.mubr.msk.bf16.vlgmr.msra.gmra.mxu0 %vm426_vm1, %v1217_v17  ;;  %1126 = vmatmul.mubr.msk.bf16.vlgmr.msra.gmra.mxu1 %vm426_vm1, %v1218_v18 }
  0x31   : > { %553 = vmatprep.mubr.bf16.mxu0 %v1304_v2  ;;  %683 = vmatprep.mubr.bf16.mxu1 %v1304_v2 }
  0x38   : > { %1114 = vmatmul.mubr.msk.bf16.gmra.mxu0 %vm426_vm1, %v1219_v19  ;;  %1127 = vmatmul.mubr.msk.bf16.gmra.mxu1 %vm426_vm1, %v1220_v20 }
  0x39   : > { %563 = vmatprep.mubr.bf16.mxu0 %v1304_v2  ;;  %693 = vmatprep.mubr.bf16.mxu1 %v1304_v2 }
  0x40   : > { %1115 = vmatmul.mubr.msk.bf16.gmra.mxu0 %vm426_vm1, %v1221_v21  ;;  %1128 = vmatmul.mubr.msk.bf16.gmra.mxu1 %vm426_vm1, %v1222_v22 }
  0x41   : > { %573 = vmatprep.mubr.bf16.mxu0 %v1304_v2  ;;  %703 = vmatprep.mubr.bf16.mxu1 %v1304_v2 }
  0x48   : > { %1116 = vmatmul.mubr.msk.bf16.gmra.mxu0 %vm426_vm1, %v1223_v23  ;;  %1129 = vmatmul.mubr.msk.bf16.gmra.mxu1 %vm426_vm1, %v1224_v24 }
  0x49   : > { %583 = vmatprep.mubr.bf16.mxu0 %v1304_v2  ;;  %713 = vmatprep.mubr.bf16.mxu1 %v1304_v2 }
  0x50   : > { %1117 = vmatmul.mubr.msk.bf16.gmra.mxu0 %vm426_vm1, %v1225_v25  ;;  %1130 = vmatmul.mubr.msk.bf16.gmra.mxu1 %vm426_vm1, %v1226_v26 }
  0x51   : > { %593 = vmatprep.mubr.bf16.mxu0 %v1304_v2  ;;  %723 = vmatprep.mubr.bf16.mxu1 %v1304_v2 }
  0x58   : > { %1118 = vmatmul.mubr.msk.bf16.gmra.mxu0 %vm426_vm1, %v1227_v27  ;;  %1131 = vmatmul.mubr.msk.bf16.gmra.mxu1 %vm426_vm1, %v1228_v28 }
  0x59   : > { %603 = vmatprep.mubr.bf16.mxu0 %v1304_v2  ;;  %733 = vmatprep.mubr.bf16.mxu1 %v1304_v2 }
  0x60   : > { %1119 = vmatmul.mubr.msk.bf16.gmra.mxu0 %vm426_vm1, %v1229_v29  ;;  %1132 = vmatmul.mubr.msk.bf16.gmra.mxu1 %vm426_vm1, %v1230_v30 }
  0x61   : > { %613 = vmatprep.mubr.bf16.mxu0 %v1304_v2  ;;  %743 = vmatprep.mubr.bf16.mxu1 %v1304_v2 }
  0x68   : > { %1120 = vmatmul.mubr.msk.bf16.gmra.mxu0 %vm426_vm1, %v1231_v31  ;;  %1133 = vmatmul.mubr.msk.bf16.gmra.mxu1 %vm426_vm1, %v1232_v32 }
  0x69   : > { %623 = vmatprep.mubr.bf16.mxu0 %v1304_v2  ;;  %753 = vmatprep.mubr.bf16.mxu1 %v1304_v2 }
  0x70   : > { %1121 = vmatmul.mubr.msk.bf16.gmra.mxu0 %vm426_vm1, %v1233_v33  ;;  %1134 = vmatmul.mubr.msk.bf16.gmra.mxu1 %vm426_vm1, %v1234_v34 }
  0x71   : > { %633 = vmatprep.mubr.bf16.mxu0 %v1304_v2  ;;  %763 = vmatprep.mubr.bf16.mxu1 %v1304_v2 }
  0x78   : > { %1122 = vmatmul.mubr.msk.bf16.gmra.mxu0 %vm426_vm1, %v1235_v35  ;;  %1135 = vmatmul.mubr.msk.bf16.gmra.mxu1 %vm426_vm1, %v1236_v36 }
  0x79   : > { %643 = vmatprep.mubr.bf16.mxu0 %v1304_v2  ;;  %773 = vmatprep.mubr.bf16.mxu1 %v1304_v2 }
  0x80   : > { %1123 = vmatmul.mubr.msk.bf16.gmra.mxu0 %vm426_vm1, %v1237_v37  ;;  %1136 = vmatmul.mubr.msk.bf16.gmra.mxu1 %vm426_vm1, %v1238_v38 }
  0x81   : > { %653 = vmatprep.mubr.bf16.mxu0 %v1304_v2  ;;  %783 = vmatprep.mubr.bf16.mxu1 %v1304_v2 }
  0x88   : > { %1124 = vmatmul.mubr.msk.bf16.gmra.mxu0 %vm426_vm1, %v1239_v39  ;;  %1137 = vmatmul.mubr.msk.bf16.gmra.mxu1 %vm426_vm1, %v1240_v40 }
  0x89   : > { %663 = vmatprep.mubr.bf16.mxu0 %v1304_v2 }
  0x90   : > { %1125 = vmatmul.mubr.msk.bf16.gmra.mxu0 %vm426_vm1, %v1241_v41 }
  0xf0   : > { %v545_v49 = vpop.f32.mrf.mxu0  ;;  %v675_v50 = vpop.f32.mrf.mxu1 }
  0xf1   : > { %v546_v51 = vadd.f32 %v545_v49, %v1495_v47  ;;  %v676_v52 = vadd.f32 %v675_v50, %v1495_v47 }
  0xf2   : > { %v547_v53 = vpop.f32.mrf.mxu0  ;;  %v677_v54 = vpop.f32.mrf.mxu1 }
  0xf3   : > { %v794_v55 = vmax.f32 %v546_v51, 0.0  ;;  %v548_v56 = vadd.f32 %v547_v53, %v1499_v48  ;;  %v846_v57 = vmax.f32 %v676_v52, 0.0  ;;  %v678_v58 = vadd.f32 %v677_v54, %v1499_v48 }
  0xf4   : > { %v549_v59 = vpop.f32.mrf.mxu0  ;;  %v679_v60 = vpop.f32.mrf.mxu1 }
  0xf5   : > { %894 = vst [vmem:[%s1505_s9] sm:$0xff] %v794_v55  ;;  %v795_v61 = vmax.f32 %v548_v56, 0.0  ;;  %946 = vst [vmem:[%s1505_s9 + $0x1a0] sm:$0xff] %v846_v57  ;;  %v550_v62 = vadd.f32 %v549_v59, %v1495_v47  ;;  %v847_v63 = vmax.f32 %v678_v58, 0.0  ;;  %v680_v0 = vadd.f32 %v679_v60, %v1495_v47 }
  0xf6   : > { %v551_v1 = vpop.f32.mrf.mxu0  ;;  %v681_v2 = vpop.f32.mrf.mxu1 }
  0xf7   : > { %895 = vst [vmem:[%s1505_s9 + $0x8] sm:$0xff] %v795_v61  ;;  %v796_v3 = vmax.f32 %v550_v62, 0.0  ;;  %947 = vst [vmem:[%s1505_s9 + $0x1a8] sm:$0xff] %v847_v63  ;;  %v552_v4 = vadd.f32 %v551_v1, %v1499_v48  ;;  %v848_v5 = vmax.f32 %v680_v0, 0.0  ;;  %v682_v6 = vadd.f32 %v681_v2, %v1499_v48 }
  0xf8   : > { %v555_v7 = vpop.f32.mrf.mxu0  ;;  %v685_v8 = vpop.f32.mrf.mxu1 }
  0xf9   : > { %896 = vst [vmem:[%s1505_s9 + $0x10] sm:$0xff] %v796_v3  ;;  %v797_v9 = vmax.f32 %v552_v4, 0.0  ;;  %948 = vst [vmem:[%s1505_s9 + $0x1b0] sm:$0xff] %v848_v5  ;;  %v556_v10 = vadd.f32 %v555_v7, %v1495_v47  ;;  %v849_v11 = vmax.f32 %v682_v6, 0.0  ;;  %v686_v12 = vadd.f32 %v685_v8, %v1495_v47 }
  0xfa   : > { %v557_v13 = vpop.f32.mrf.mxu0  ;;  %v687_v14 = vpop.f32.mrf.mxu1 }
  0xfb   : > { %897 = vst [vmem:[%s1505_s9 + $0x18] sm:$0xff] %v797_v9  ;;  %v798_v15 = vmax.f32 %v556_v10, 0.0  ;;  %949 = vst [vmem:[%s1505_s9 + $0x1b8] sm:$0xff] %v849_v11  ;;  %v558_v16 = vadd.f32 %v557_v13, %v1499_v48  ;;  %v850_v17 = vmax.f32 %v686_v12, 0.0  ;;  %v688_v18 = vadd.f32 %v687_v14, %v1499_v48 }
  0xfc   : > { %v559_v19 = vpop.f32.mrf.mxu0  ;;  %v689_v20 = vpop.f32.mrf.mxu1 }
  0xfd   : > { %898 = vst [vmem:[%s1505_s9 + $0x20] sm:$0xff] %v798_v15  ;;  %v799_v21 = vmax.f32 %v558_v16, 0.0  ;;  %950 = vst [vmem:[%s1505_s9 + $0x1c0] sm:$0xff] %v850_v17  ;;  %v560_v22 = vadd.f32 %v559_v19, %v1495_v47  ;;  %v851_v23 = vmax.f32 %v688_v18, 0.0  ;;  %v690_v24 = vadd.f32 %v689_v20, %v1495_v47 }
  0xfe   : > { %v561_v25 = vpop.f32.mrf.mxu0  ;;  %v691_v26 = vpop.f32.mrf.mxu1 }
  0xff   : > { %899 = vst [vmem:[%s1505_s9 + $0x28] sm:$0xff] %v799_v21  ;;  %v800_v27 = vmax.f32 %v560_v22, 0.0  ;;  %951 = vst [vmem:[%s1505_s9 + $0x1c8] sm:$0xff] %v851_v23  ;;  %v562_v28 = vadd.f32 %v561_v25, %v1499_v48  ;;  %v852_v29 = vmax.f32 %v690_v24, 0.0  ;;  %v692_v30 = vadd.f32 %v691_v26, %v1499_v48 }
 0x100   : > { %v565_v31 = vpop.f32.mrf.mxu0  ;;  %v695_v32 = vpop.f32.mrf.mxu1 }
 0x101   : > { %900 = vst [vmem:[%s1505_s9 + $0x30] sm:$0xff] %v800_v27  ;;  %v801_v33 = vmax.f32 %v562_v28, 0.0  ;;  %952 = vst [vmem:[%s1505_s9 + $0x1d0] sm:$0xff] %v852_v29  ;;  %v566_v34 = vadd.f32 %v565_v31, %v1495_v47  ;;  %v853_v35 = vmax.f32 %v692_v30, 0.0  ;;  %v696_v36 = vadd.f32 %v695_v32, %v1495_v47 }
 0x102   : > { %v567_v37 = vpop.f32.mrf.mxu0  ;;  %v697_v38 = vpop.f32.mrf.mxu1 }
 0x103   : > { %901 = vst [vmem:[%s1505_s9 + $0x38] sm:$0xff] %v801_v33  ;;  %v802_v39 = vmax.f32 %v566_v34, 0.0  ;;  %953 = vst [vmem:[%s1505_s9 + $0x1d8] sm:$0xff] %v853_v35  ;;  %v568_v40 = vadd.f32 %v567_v37, %v1499_v48  ;;  %v854_v41 = vmax.f32 %v696_v36, 0.0  ;;  %v698_v42 = vadd.f32 %v697_v38, %v1499_v48 }
 0x104   : > { %v569_v43 = vpop.f32.mrf.mxu0  ;;  %v699_v44 = vpop.f32.mrf.mxu1 }
 0x105   : > { %902 = vst [vmem:[%s1505_s9 + $0x40] sm:$0xff] %v802_v39  ;;  %v803_v45 = vmax.f32 %v568_v40, 0.0  ;;  %954 = vst [vmem:[%s1505_s9 + $0x1e0] sm:$0xff] %v854_v41  ;;  %v570_v46 = vadd.f32 %v569_v43, %v1495_v47  ;;  %v855_v49 = vmax.f32 %v698_v42, 0.0  ;;  %v700_v50 = vadd.f32 %v699_v44, %v1495_v47 }
 0x106   : > { %v571_v51 = vpop.f32.mrf.mxu0  ;;  %v701_v52 = vpop.f32.mrf.mxu1 }
 0x107   : > { %903 = vst [vmem:[%s1505_s9 + $0x48] sm:$0xff] %v803_v45  ;;  %v804_v53 = vmax.f32 %v570_v46, 0.0  ;;  %955 = vst [vmem:[%s1505_s9 + $0x1e8] sm:$0xff] %v855_v49  ;;  %v572_v54 = vadd.f32 %v571_v51, %v1499_v48  ;;  %v856_v55 = vmax.f32 %v700_v50, 0.0  ;;  %v702_v56 = vadd.f32 %v701_v52, %v1499_v48 }
 0x108   : > { %v575_v57 = vpop.f32.mrf.mxu0  ;;  %v705_v58 = vpop.f32.mrf.mxu1 }
 0x109   : > { %904 = vst [vmem:[%s1505_s9 + $0x50] sm:$0xff] %v804_v53  ;;  %v805_v59 = vmax.f32 %v572_v54, 0.0  ;;  %956 = vst [vmem:[%s1505_s9 + $0x1f0] sm:$0xff] %v856_v55  ;;  %v576_v60 = vadd.f32 %v575_v57, %v1495_v47  ;;  %v857_v61 = vmax.f32 %v702_v56, 0.0  ;;  %v706_v62 = vadd.f32 %v705_v58, %v1495_v47 }
 0x10a   : > { %v577_v63 = vpop.f32.mrf.mxu0  ;;  %v707_v0 = vpop.f32.mrf.mxu1 }
 0x10b   : > { %905 = vst [vmem:[%s1505_s9 + $0x58] sm:$0xff] %v805_v59  ;;  %v806_v1 = vmax.f32 %v576_v60, 0.0  ;;  %957 = vst [vmem:[%s1505_s9 + $0x1f8] sm:$0xff] %v857_v61  ;;  %v578_v2 = vadd.f32 %v577_v63, %v1499_v48  ;;  %v858_v3 = vmax.f32 %v706_v62, 0.0  ;;  %v708_v4 = vadd.f32 %v707_v0, %v1499_v48 }
 0x10c   : > { %v579_v5 = vpop.f32.mrf.mxu0  ;;  %v709_v6 = vpop.f32.mrf.mxu1 }
 0x10d   : > { %906 = vst [vmem:[%s1505_s9 + $0x60] sm:$0xff] %v806_v1  ;;  %v807_v7 = vmax.f32 %v578_v2, 0.0  ;;  %958 = vst [vmem:[%s1505_s9 + $0x200] sm:$0xff] %v858_v3  ;;  %v580_v8 = vadd.f32 %v579_v5, %v1495_v47  ;;  %v859_v9 = vmax.f32 %v708_v4, 0.0  ;;  %v710_v10 = vadd.f32 %v709_v6, %v1495_v47 }
 0x10e   : > { %v581_v11 = vpop.f32.mrf.mxu0  ;;  %v711_v12 = vpop.f32.mrf.mxu1 }
 0x10f   : > { %907 = vst [vmem:[%s1505_s9 + $0x68] sm:$0xff] %v807_v7  ;;  %v808_v13 = vmax.f32 %v580_v8, 0.0  ;;  %959 = vst [vmem:[%s1505_s9 + $0x208] sm:$0xff] %v859_v9  ;;  %v582_v14 = vadd.f32 %v581_v11, %v1499_v48  ;;  %v860_v15 = vmax.f32 %v710_v10, 0.0  ;;  %v712_v16 = vadd.f32 %v711_v12, %v1499_v48 }
 0x110   : > { %v585_v17 = vpop.f32.mrf.mxu0  ;;  %v715_v18 = vpop.f32.mrf.mxu1 }
 0x111   : > { %908 = vst [vmem:[%s1505_s9 + $0x70] sm:$0xff] %v808_v13  ;;  %v809_v19 = vmax.f32 %v582_v14, 0.0  ;;  %960 = vst [vmem:[%s1505_s9 + $0x210] sm:$0xff] %v860_v15  ;;  %v586_v20 = vadd.f32 %v585_v17, %v1495_v47  ;;  %v861_v21 = vmax.f32 %v712_v16, 0.0  ;;  %v716_v22 = vadd.f32 %v715_v18, %v1495_v47 }
 0x112   : > { %v587_v23 = vpop.f32.mrf.mxu0  ;;  %v717_v24 = vpop.f32.mrf.mxu1 }
 0x113   : > { %909 = vst [vmem:[%s1505_s9 + $0x78] sm:$0xff] %v809_v19  ;;  %v810_v25 = vmax.f32 %v586_v20, 0.0  ;;  %961 = vst [vmem:[%s1505_s9 + $0x218] sm:$0xff] %v861_v21  ;;  %v588_v26 = vadd.f32 %v587_v23, %v1499_v48  ;;  %v862_v27 = vmax.f32 %v716_v22, 0.0  ;;  %v718_v28 = vadd.f32 %v717_v24, %v1499_v48 }
 0x114   : > { %v589_v29 = vpop.f32.mrf.mxu0  ;;  %v719_v30 = vpop.f32.mrf.mxu1 }
 0x115   : > { %910 = vst [vmem:[%s1505_s9 + $0x80] sm:$0xff] %v810_v25  ;;  %v811_v31 = vmax.f32 %v588_v26, 0.0  ;;  %962 = vst [vmem:[%s1505_s9 + $0x220] sm:$0xff] %v862_v27  ;;  %v590_v32 = vadd.f32 %v589_v29, %v1495_v47  ;;  %v863_v33 = vmax.f32 %v718_v28, 0.0  ;;  %v720_v34 = vadd.f32 %v719_v30, %v1495_v47 }
 0x116   : > { %v591_v35 = vpop.f32.mrf.mxu0  ;;  %v721_v36 = vpop.f32.mrf.mxu1 }
 0x117   : > { %911 = vst [vmem:[%s1505_s9 + $0x88] sm:$0xff] %v811_v31  ;;  %v812_v37 = vmax.f32 %v590_v32, 0.0  ;;  %963 = vst [vmem:[%s1505_s9 + $0x228] sm:$0xff] %v863_v33  ;;  %v592_v38 = vadd.f32 %v591_v35, %v1499_v48  ;;  %v864_v39 = vmax.f32 %v720_v34, 0.0  ;;  %v722_v40 = vadd.f32 %v721_v36, %v1499_v48 }
 0x118   : > { %v595_v41 = vpop.f32.mrf.mxu0  ;;  %v725_v42 = vpop.f32.mrf.mxu1 }
 0x119   : > { %912 = vst [vmem:[%s1505_s9 + $0x90] sm:$0xff] %v812_v37  ;;  %v813_v43 = vmax.f32 %v592_v38, 0.0  ;;  %964 = vst [vmem:[%s1505_s9 + $0x230] sm:$0xff] %v864_v39  ;;  %v596_v44 = vadd.f32 %v595_v41, %v1495_v47  ;;  %v865_v45 = vmax.f32 %v722_v40, 0.0  ;;  %v726_v46 = vadd.f32 %v725_v42, %v1495_v47 }
 0x11a   : > { %v597_v49 = vpop.f32.mrf.mxu0  ;;  %v727_v50 = vpop.f32.mrf.mxu1 }
 0x11b   : > { %913 = vst [vmem:[%s1505_s9 + $0x98] sm:$0xff] %v813_v43  ;;  %v814_v51 = vmax.f32 %v596_v44, 0.0  ;;  %965 = vst [vmem:[%s1505_s9 + $0x238] sm:$0xff] %v865_v45  ;;  %v598_v52 = vadd.f32 %v597_v49, %v1499_v48  ;;  %v866_v53 = vmax.f32 %v726_v46, 0.0  ;;  %v728_v54 = vadd.f32 %v727_v50, %v1499_v48 }
 0x11c   : > { %v599_v55 = vpop.f32.mrf.mxu0  ;;  %v729_v56 = vpop.f32.mrf.mxu1 }
 0x11d   : > { %914 = vst [vmem:[%s1505_s9 + $0xa0] sm:$0xff] %v814_v51  ;;  %v815_v57 = vmax.f32 %v598_v52, 0.0  ;;  %966 = vst [vmem:[%s1505_s9 + $0x240] sm:$0xff] %v866_v53  ;;  %v600_v58 = vadd.f32 %v599_v55, %v1495_v47  ;;  %v867_v59 = vmax.f32 %v728_v54, 0.0  ;;  %v730_v60 = vadd.f32 %v729_v56, %v1495_v47 }
 0x11e   : > { %v601_v61 = vpop.f32.mrf.mxu0  ;;  %v731_v62 = vpop.f32.mrf.mxu1 }
 0x11f   : > { %915 = vst [vmem:[%s1505_s9 + $0xa8] sm:$0xff] %v815_v57  ;;  %v816_v63 = vmax.f32 %v600_v58, 0.0  ;;  %967 = vst [vmem:[%s1505_s9 + $0x248] sm:$0xff] %v867_v59  ;;  %v602_v0 = vadd.f32 %v601_v61, %v1499_v48  ;;  %v868_v1 = vmax.f32 %v730_v60, 0.0  ;;  %v732_v2 = vadd.f32 %v731_v62, %v1499_v48 }
 0x120   : > { %v605_v3 = vpop.f32.mrf.mxu0  ;;  %v735_v4 = vpop.f32.mrf.mxu1 }
 0x121   : > { %916 = vst [vmem:[%s1505_s9 + $0xb0] sm:$0xff] %v816_v63  ;;  %v817_v5 = vmax.f32 %v602_v0, 0.0  ;;  %968 = vst [vmem:[%s1505_s9 + $0x250] sm:$0xff] %v868_v1  ;;  %v606_v6 = vadd.f32 %v605_v3, %v1495_v47  ;;  %v869_v7 = vmax.f32 %v732_v2, 0.0  ;;  %v736_v8 = vadd.f32 %v735_v4, %v1495_v47 }
 0x122   : > { %v607_v9 = vpop.f32.mrf.mxu0  ;;  %v737_v10 = vpop.f32.mrf.mxu1 }
 0x123   : > { %917 = vst [vmem:[%s1505_s9 + $0xb8] sm:$0xff] %v817_v5  ;;  %v818_v11 = vmax.f32 %v606_v6, 0.0  ;;  %969 = vst [vmem:[%s1505_s9 + $0x258] sm:$0xff] %v869_v7  ;;  %v608_v12 = vadd.f32 %v607_v9, %v1499_v48  ;;  %v870_v13 = vmax.f32 %v736_v8, 0.0  ;;  %v738_v14 = vadd.f32 %v737_v10, %v1499_v48 }
 0x124   : > { %v609_v15 = vpop.f32.mrf.mxu0  ;;  %v739_v16 = vpop.f32.mrf.mxu1 }
 0x125   : > { %918 = vst [vmem:[%s1505_s9 + $0xc0] sm:$0xff] %v818_v11  ;;  %v819_v17 = vmax.f32 %v608_v12, 0.0  ;;  %970 = vst [vmem:[%s1505_s9 + $0x260] sm:$0xff] %v870_v13  ;;  %v610_v18 = vadd.f32 %v609_v15, %v1495_v47  ;;  %v871_v19 = vmax.f32 %v738_v14, 0.0  ;;  %v740_v20 = vadd.f32 %v739_v16, %v1495_v47 }
 0x126   : > { %v611_v21 = vpop.f32.mrf.mxu0  ;;  %v741_v22 = vpop.f32.mrf.mxu1 }
 0x127   : > { %919 = vst [vmem:[%s1505_s9 + $0xc8] sm:$0xff] %v819_v17  ;;  %v820_v23 = vmax.f32 %v610_v18, 0.0  ;;  %971 = vst [vmem:[%s1505_s9 + $0x268] sm:$0xff] %v871_v19  ;;  %v612_v24 = vadd.f32 %v611_v21, %v1499_v48  ;;  %v872_v25 = vmax.f32 %v740_v20, 0.0  ;;  %v742_v26 = vadd.f32 %v741_v22, %v1499_v48 }
 0x128   : > { %v615_v27 = vpop.f32.mrf.mxu0  ;;  %v745_v28 = vpop.f32.mrf.mxu1 }
 0x129   : > { %920 = vst [vmem:[%s1505_s9 + $0xd0] sm:$0xff] %v820_v23  ;;  %v821_v29 = vmax.f32 %v612_v24, 0.0  ;;  %972 = vst [vmem:[%s1505_s9 + $0x270] sm:$0xff] %v872_v25  ;;  %v616_v30 = vadd.f32 %v615_v27, %v1495_v47  ;;  %v873_v31 = vmax.f32 %v742_v26, 0.0  ;;  %v746_v32 = vadd.f32 %v745_v28, %v1495_v47 }
 0x12a   : > { %v617_v33 = vpop.f32.mrf.mxu0  ;;  %v747_v34 = vpop.f32.mrf.mxu1 }
 0x12b   : > { %921 = vst [vmem:[%s1505_s9 + $0xd8] sm:$0xff] %v821_v29  ;;  %v822_v35 = vmax.f32 %v616_v30, 0.0  ;;  %973 = vst [vmem:[%s1505_s9 + $0x278] sm:$0xff] %v873_v31  ;;  %v618_v36 = vadd.f32 %v617_v33, %v1499_v48  ;;  %v874_v37 = vmax.f32 %v746_v32, 0.0  ;;  %v748_v38 = vadd.f32 %v747_v34, %v1499_v48 }
 0x12c   : > { %v619_v39 = vpop.f32.mrf.mxu0  ;;  %v749_v40 = vpop.f32.mrf.mxu1 }
 0x12d   : > { %922 = vst [vmem:[%s1505_s9 + $0xe0] sm:$0xff] %v822_v35  ;;  %v823_v41 = vmax.f32 %v618_v36, 0.0  ;;  %974 = vst [vmem:[%s1505_s9 + $0x280] sm:$0xff] %v874_v37  ;;  %v620_v42 = vadd.f32 %v619_v39, %v1495_v47  ;;  %v875_v43 = vmax.f32 %v748_v38, 0.0  ;;  %v750_v44 = vadd.f32 %v749_v40, %v1495_v47 }
 0x12e   : > { %v621_v45 = vpop.f32.mrf.mxu0  ;;  %v751_v46 = vpop.f32.mrf.mxu1 }
 0x12f   : > { %923 = vst [vmem:[%s1505_s9 + $0xe8] sm:$0xff] %v823_v41  ;;  %v824_v49 = vmax.f32 %v620_v42, 0.0  ;;  %975 = vst [vmem:[%s1505_s9 + $0x288] sm:$0xff] %v875_v43  ;;  %v622_v50 = vadd.f32 %v621_v45, %v1499_v48  ;;  %v876_v51 = vmax.f32 %v750_v44, 0.0  ;;  %v752_v52 = vadd.f32 %v751_v46, %v1499_v48 }
 0x130   : > { %v625_v53 = vpop.f32.mrf.mxu0  ;;  %v755_v54 = vpop.f32.mrf.mxu1 }
 0x131   : > { %924 = vst [vmem:[%s1505_s9 + $0xf0] sm:$0xff] %v824_v49  ;;  %v825_v55 = vmax.f32 %v622_v50, 0.0  ;;  %976 = vst [vmem:[%s1505_s9 + $0x290] sm:$0xff] %v876_v51  ;;  %v626_v56 = vadd.f32 %v625_v53, %v1495_v47  ;;  %v877_v57 = vmax.f32 %v752_v52, 0.0  ;;  %v756_v58 = vadd.f32 %v755_v54, %v1495_v47 }
 0x132   : > { %v627_v59 = vpop.f32.mrf.mxu0  ;;  %v757_v60 = vpop.f32.mrf.mxu1 }
 0x133   : > { %925 = vst [vmem:[%s1505_s9 + $0xf8] sm:$0xff] %v825_v55  ;;  %v826_v61 = vmax.f32 %v626_v56, 0.0  ;;  %977 = vst [vmem:[%s1505_s9 + $0x298] sm:$0xff] %v877_v57  ;;  %v628_v62 = vadd.f32 %v627_v59, %v1499_v48  ;;  %v878_v63 = vmax.f32 %v756_v58, 0.0  ;;  %v758_v0 = vadd.f32 %v757_v60, %v1499_v48 }
 0x134   : > { %v629_v1 = vpop.f32.mrf.mxu0  ;;  %v759_v2 = vpop.f32.mrf.mxu1 }
 0x135   : > { %926 = vst [vmem:[%s1505_s9 + $0x100] sm:$0xff] %v826_v61  ;;  %v827_v3 = vmax.f32 %v628_v62, 0.0  ;;  %978 = vst [vmem:[%s1505_s9 + $0x2a0] sm:$0xff] %v878_v63  ;;  %v630_v4 = vadd.f32 %v629_v1, %v1495_v47  ;;  %v879_v5 = vmax.f32 %v758_v0, 0.0  ;;  %v760_v6 = vadd.f32 %v759_v2, %v1495_v47 }
 0x136   : > { %v631_v7 = vpop.f32.mrf.mxu0  ;;  %v761_v8 = vpop.f32.mrf.mxu1 }
 0x137   : > { %927 = vst [vmem:[%s1505_s9 + $0x108] sm:$0xff] %v827_v3  ;;  %v828_v9 = vmax.f32 %v630_v4, 0.0  ;;  %979 = vst [vmem:[%s1505_s9 + $0x2a8] sm:$0xff] %v879_v5  ;;  %v632_v10 = vadd.f32 %v631_v7, %v1499_v48  ;;  %v880_v11 = vmax.f32 %v760_v6, 0.0  ;;  %v762_v12 = vadd.f32 %v761_v8, %v1499_v48 }
 0x138   : > { %v635_v13 = vpop.f32.mrf.mxu0  ;;  %v765_v14 = vpop.f32.mrf.mxu1 }
 0x139   : > { %928 = vst [vmem:[%s1505_s9 + $0x110] sm:$0xff] %v828_v9  ;;  %v829_v15 = vmax.f32 %v632_v10, 0.0  ;;  %980 = vst [vmem:[%s1505_s9 + $0x2b0] sm:$0xff] %v880_v11  ;;  %v636_v16 = vadd.f32 %v635_v13, %v1495_v47  ;;  %v881_v17 = vmax.f32 %v762_v12, 0.0  ;;  %v766_v18 = vadd.f32 %v765_v14, %v1495_v47 }
 0x13a   : > { %v637_v19 = vpop.f32.mrf.mxu0  ;;  %v767_v20 = vpop.f32.mrf.mxu1 }
 0x13b   : > { %929 = vst [vmem:[%s1505_s9 + $0x118] sm:$0xff] %v829_v15  ;;  %v830_v21 = vmax.f32 %v636_v16, 0.0  ;;  %981 = vst [vmem:[%s1505_s9 + $0x2b8] sm:$0xff] %v881_v17  ;;  %v638_v22 = vadd.f32 %v637_v19, %v1499_v48  ;;  %v882_v23 = vmax.f32 %v766_v18, 0.0  ;;  %v768_v24 = vadd.f32 %v767_v20, %v1499_v48 }
 0x13c   : > { %v639_v25 = vpop.f32.mrf.mxu0  ;;  %v769_v26 = vpop.f32.mrf.mxu1 }
 0x13d   : > { %930 = vst [vmem:[%s1505_s9 + $0x120] sm:$0xff] %v830_v21  ;;  %v831_v27 = vmax.f32 %v638_v22, 0.0  ;;  %982 = vst [vmem:[%s1505_s9 + $0x2c0] sm:$0xff] %v882_v23  ;;  %v640_v28 = vadd.f32 %v639_v25, %v1495_v47  ;;  %v883_v29 = vmax.f32 %v768_v24, 0.0  ;;  %v770_v30 = vadd.f32 %v769_v26, %v1495_v47 }
 0x13e   : > { %v641_v31 = vpop.f32.mrf.mxu0  ;;  %v771_v32 = vpop.f32.mrf.mxu1 }
 0x13f   : > { %931 = vst [vmem:[%s1505_s9 + $0x128] sm:$0xff] %v831_v27  ;;  %v832_v33 = vmax.f32 %v640_v28, 0.0  ;;  %983 = vst [vmem:[%s1505_s9 + $0x2c8] sm:$0xff] %v883_v29  ;;  %v642_v34 = vadd.f32 %v641_v31, %v1499_v48  ;;  %v884_v35 = vmax.f32 %v770_v30, 0.0  ;;  %v772_v36 = vadd.f32 %v771_v32, %v1499_v48 }
 0x140   : > { %v645_v37 = vpop.f32.mrf.mxu0  ;;  %v775_v38 = vpop.f32.mrf.mxu1 }
 0x141   : > { %932 = vst [vmem:[%s1505_s9 + $0x130] sm:$0xff] %v832_v33  ;;  %v833_v39 = vmax.f32 %v642_v34, 0.0  ;;  %984 = vst [vmem:[%s1505_s9 + $0x2d0] sm:$0xff] %v884_v35  ;;  %v646_v40 = vadd.f32 %v645_v37, %v1495_v47  ;;  %v885_v41 = vmax.f32 %v772_v36, 0.0  ;;  %v776_v42 = vadd.f32 %v775_v38, %v1495_v47 }
 0x142   : > { %v647_v43 = vpop.f32.mrf.mxu0  ;;  %v777_v44 = vpop.f32.mrf.mxu1 }
 0x143   : > { %933 = vst [vmem:[%s1505_s9 + $0x138] sm:$0xff] %v833_v39  ;;  %v834_v45 = vmax.f32 %v646_v40, 0.0  ;;  %985 = vst [vmem:[%s1505_s9 + $0x2d8] sm:$0xff] %v885_v41  ;;  %v648_v46 = vadd.f32 %v647_v43, %v1499_v48  ;;  %v886_v49 = vmax.f32 %v776_v42, 0.0  ;;  %v778_v50 = vadd.f32 %v777_v44, %v1499_v48 }
 0x144   : > { %v649_v51 = vpop.f32.mrf.mxu0  ;;  %v779_v52 = vpop.f32.mrf.mxu1 }
 0x145   : > { %934 = vst [vmem:[%s1505_s9 + $0x140] sm:$0xff] %v834_v45  ;;  %v835_v53 = vmax.f32 %v648_v46, 0.0  ;;  %986 = vst [vmem:[%s1505_s9 + $0x2e0] sm:$0xff] %v886_v49  ;;  %v650_v54 = vadd.f32 %v649_v51, %v1495_v47  ;;  %v887_v55 = vmax.f32 %v778_v50, 0.0  ;;  %v780_v56 = vadd.f32 %v779_v52, %v1495_v47 }
 0x146   : > { %v651_v57 = vpop.f32.mrf.mxu0  ;;  %v781_v58 = vpop.f32.mrf.mxu1 }
 0x147   : > { %935 = vst [vmem:[%s1505_s9 + $0x148] sm:$0xff] %v835_v53  ;;  %v836_v59 = vmax.f32 %v650_v54, 0.0  ;;  %987 = vst [vmem:[%s1505_s9 + $0x2e8] sm:$0xff] %v887_v55  ;;  %v652_v60 = vadd.f32 %v651_v57, %v1499_v48  ;;  %v888_v61 = vmax.f32 %v780_v56, 0.0  ;;  %v782_v62 = vadd.f32 %v781_v58, %v1499_v48 }
 0x148   : > { %v655_v63 = vpop.f32.mrf.mxu0  ;;  %v785_v0 = vpop.f32.mrf.mxu1 }
 0x149   : > { %936 = vst [vmem:[%s1505_s9 + $0x150] sm:$0xff] %v836_v59  ;;  %v837_v1 = vmax.f32 %v652_v60, 0.0  ;;  %988 = vst [vmem:[%s1505_s9 + $0x2f0] sm:$0xff] %v888_v61  ;;  %v656_v2 = vadd.f32 %v655_v63, %v1495_v47  ;;  %v889_v3 = vmax.f32 %v782_v62, 0.0  ;;  %v786_v4 = vadd.f32 %v785_v0, %v1495_v47 }
 0x14a   : > { %v657_v5 = vpop.f32.mrf.mxu0  ;;  %v787_v6 = vpop.f32.mrf.mxu1 }
 0x14b   : > { %937 = vst [vmem:[%s1505_s9 + $0x158] sm:$0xff] %v837_v1  ;;  %v838_v7 = vmax.f32 %v656_v2, 0.0  ;;  %989 = vst [vmem:[%s1505_s9 + $0x2f8] sm:$0xff] %v889_v3  ;;  %v658_v8 = vadd.f32 %v657_v5, %v1499_v48  ;;  %v890_v9 = vmax.f32 %v786_v4, 0.0  ;;  %v788_v10 = vadd.f32 %v787_v6, %v1499_v48 }
 0x14c   : > { %v659_v11 = vpop.f32.mrf.mxu0  ;;  %v789_v12 = vpop.f32.mrf.mxu1 }
 0x14d   : > { %938 = vst [vmem:[%s1505_s9 + $0x160] sm:$0xff] %v838_v7  ;;  %v839_v13 = vmax.f32 %v658_v8, 0.0  ;;  %990 = vst [vmem:[%s1505_s9 + $0x300] sm:$0xff] %v890_v9  ;;  %v660_v14 = vadd.f32 %v659_v11, %v1495_v47  ;;  %v891_v15 = vmax.f32 %v788_v10, 0.0  ;;  %v790_v16 = vadd.f32 %v789_v12, %v1495_v47 }
 0x14e   : > { %v661_v17 = vpop.f32.mrf.mxu0  ;;  %v791_v18 = vpop.f32.mrf.mxu1 }
 0x14f   : > { %939 = vst [vmem:[%s1505_s9 + $0x168] sm:$0xff] %v839_v13  ;;  %v840_v19 = vmax.f32 %v660_v14, 0.0  ;;  %991 = vst [vmem:[%s1505_s9 + $0x308] sm:$0xff] %v891_v15  ;;  %v662_v20 = vadd.f32 %v661_v17, %v1499_v48  ;;  %v892_v21 = vmax.f32 %v790_v16, 0.0  ;;  %v792_v22 = vadd.f32 %v791_v18, %v1499_v48 }
 0x150   : > { %v665_v23 = vpop.f32.mrf.mxu0 }
 0x151   : > { %940 = vst [vmem:[%s1505_s9 + $0x170] sm:$0xff] %v840_v19  ;;  %v841_v24 = vmax.f32 %v662_v20, 0.0  ;;  %992 = vst [vmem:[%s1505_s9 + $0x310] sm:$0xff] %v892_v21  ;;  %v666_v25 = vadd.f32 %v665_v23, %v1495_v47  ;;  %v893_v26 = vmax.f32 %v792_v22, 0.0 }
 0x152   : > { %v667_v27 = vpop.f32.mrf.mxu0 }
 0x153   : > { %941 = vst [vmem:[%s1505_s9 + $0x178] sm:$0xff] %v841_v24  ;;  %v842_v28 = vmax.f32 %v666_v25, 0.0  ;;  %993 = vst [vmem:[%s1505_s9 + $0x318] sm:$0xff] %v893_v26  ;;  %v668_v29 = vadd.f32 %v667_v27, %v1499_v48 }
 0x154   : > { %v669_v30 = vpop.f32.mrf.mxu0 }
 0x155   : > { %942 = vst [vmem:[%s1505_s9 + $0x180] sm:$0xff] %v842_v28  ;;  %v843_v31 = vmax.f32 %v668_v29, 0.0  ;;  %v670_v32 = vadd.f32 %v669_v30, %v1495_v47 }
 0x156   : > { %v671_v33 = vpop.f32.mrf.mxu0 }
 0x157   : > { %943 = vst [vmem:[%s1505_s9 + $0x188] sm:$0xff] %v843_v31  ;;  %v844_v34 = vmax.f32 %v670_v32, 0.0  ;;  %v672_v35 = vadd.f32 %v671_v33, %v1499_v48 }
 0x159   : > { %944 = vst [vmem:[%s1505_s9 + $0x190] sm:$0xff] %v844_v34  ;;  %v845_v36 = vmax.f32 %v672_v35, 0.0 }
 0x15b   : > { %945 = vst [vmem:[%s1505_s9 + $0x198] sm:$0xff] %v845_v36 }
 0x15c   : > { %1255 = shalt.err (!%p1252_p3)
}
 0x15d   : > { %s1256_s29 = scalar_lea.hbm %s1706_s24, 12800  ;;  %s1260_s5 = scalar_lea.hbm %s1757_s3, 25600 }
 0x15e   : > { %p1257_p4 = scmp.ne.s32.totalorder %s1706_s24, %s1256_s29  ;;  %p1261_p9 = scmp.lt.s32.totalorder %s1706_s24, %s1757_s3 }
 0x15f   : > { %p1262_p10 = scmp.lt.s32.totalorder %s1260_s5, %s1256_s29 }
 0x160   : > { %p1258_p7 = pnand %p1257_p4, %p1366_p5 }
 0x161   : > { %p1263_p11 = por %p1262_p10, %p1261_p9 }
 0x162   : > { %p1259_p8 = pneg %p1258_p7 }
 0x164   : > { %p1264_p12 = pnand %p1263_p11, %p1259_p8 }
 0x166   : > { %1267 = shalt.err (!%p1264_p12)
}
 0x167   : > { %s1306_s8 = smov 256   ;;  %s1307_s10 = smov 16  }
 0x168   : > { %1158 = dma.vmem_to_hbm [thread:$0]  (%p1366_p5), %s1708_s17, 12800, %s1706_s24, %s1714_s16, %s1306_s8, %s1306_s8, %s1307_s10  }
 0x169 PF: > { %p1164_p13 = scmp.ge.s32.totalorder %s1302_s15, 2  ;;  %s1024_s9 = sand.u32 1, %s1290_s12  }
 0x16a   : > { %s1025_s11 = scalar_lea.sflag [#allocation3], %s1024_s9 }
 0x16b   : > { %p1161_p0 = pnand %p1164_p13, %p1370_p6 }
 0x16d   : > { %p1162_p1 = pneg %p1161_p0 }
 0x16f   : > { %1285 = dma.done.wait (%p1162_p1), %s1025_s11, 12800  }
 0x170   : > { %1287 = vsyncadd (%p1162_p1), %s1025_s11, 4294954496  ;;  %p13_p2 = scmp.ge.s32.totalorder %s1353_s18, 4   ;;  %s1760_s12 = smov %s1294_s13 }
 0x171   : > { %s1761_s13 = smov %s1298_s14  ;;  %s1762_s14 = smov %s1364_s21 }
 0x172   : > { %s1763_s15 = smov %s1353_s18  ;;  %15 = sbr.rel (!%p13_p2) target bundleno = 3 (0x3), region = 67 }
 0x177   :  { %1030 = vsyncpa [#allocation3], 1 }
 0x178   :  { %1032 = vsyncpa [#allocation3 + $0x1], 1 }

</bundles_post_ra>
